<compile_context>
chip_gen: v5e
topology: v5e:2x2
jax: 0.10.0
libtpu: 0.0.40
codegen_flags: <defaults>
</compile_context>

<pallas_src>
import jax
import jax.numpy as jnp
import numpy as np
from jax.experimental import pallas as pl
from jax.experimental.pallas import tpu as pltpu

# ---- small shapes consistent with the module's constraints ----
BATCH       = 2
SEQ_LEN     = 32          # seq_len (divisible by 4)
N_CHARS     = 20          # n_chars
HIDDEN_CONV = 12          # hidden_conv (divisible by 4)
HIDDEN_FC   = 64          # hidden_fc
POOL_W      = 2           # pool_width == conv kernel size

C1    = HIDDEN_CONV                    # conv1 out channels
C2    = HIDDEN_CONV // 2               # conv2 out channels
L     = SEQ_LEN
L2    = SEQ_LEN // 2
L4    = SEQ_LEN // 4
F_IN  = (SEQ_LEN // 2) * (HIDDEN_CONV // 4)   # fc1 in-features == C2 * L4
H1    = HIDDEN_FC
H2    = HIDDEN_FC // 2
N_OUT = 2

B   = BATCH
BL  = B * L      # 64  (batch folded into matmul rows)
BL2 = B * L2     # 32
BL4 = B * L4     # 16


# ------------------------- single fused kernel --------------------------------
def fused_kernel(x_ref, w1a_ref, w1b_ref, b1_ref, w2a_ref, w2b_ref, b2_ref,
                 fw1_ref, fb1_ref, fw2_ref, fb2_ref, fw3_ref, fb3_ref,
                 out_ref, s1, s2, s3):
    # ---- conv1 (k=2, 'same' => right zero pad), cross-correlation ----------
    # h1[r] = relu(x[r] @ W1[:,:,0] + x[r+1] @ W1[:,:,1] + b1), rows r=(b,t)
    x0 = x_ref[...]                                                  # (BL, N_CHARS)
    a0 = jnp.dot(x0, w1a_ref[...], preferred_element_type=jnp.float32)   # (BL, C1)
    a1 = jnp.dot(x0, w1b_ref[...], preferred_element_type=jnp.float32)   # (BL, C1)

    # shift a1 down one row through VMEM (row r picks up a1[r+1]); the 8-row
    # zero tail is aligned and also backs the conv2 shifted-tap reads below
    s1[pl.ds(BL, 8), :] = jnp.zeros((8, C1), jnp.float32)
    s1[pl.ds(0, BL), :] = a1
    a1s = s1[pl.ds(1, BL), :]                                        # a1[r+1]
    r1 = jax.lax.broadcasted_iota(jnp.int32, (BL, C1), 0)
    a1s = jnp.where((r1 % L) == (L - 1), 0.0, a1s)                   # 'same' pad / batch edge
    h1 = jnp.maximum(a0 + a1s + b1_ref[...], 0.0)                    # (BL, C1)
    s1[pl.ds(0, BL), :] = h1                                         # tail rows stay zero

    # ---- maxpool1 (stride 2) and conv2 'same' taps --------------------------
    tap0 = jnp.maximum(s1[pl.ds(0, BL2, stride=2), :],
                       s1[pl.ds(1, BL2, stride=2), :])               # p1[r]    (BL2, C1)
    tap1 = jnp.maximum(s1[pl.ds(2, BL2, stride=2), :],
                       s1[pl.ds(3, BL2, stride=2), :])               # p1[r+1]  (BL2, C1)
    r2 = jax.lax.broadcasted_iota(jnp.int32, (BL2, C1), 0)
    tap1 = jnp.where((r2 % L2) == (L2 - 1), 0.0, tap1)               # 'same' pad / batch edge

    # ---- conv2 + ReLU --------------------------------------------------------
    h2 = jnp.maximum(
        jnp.dot(tap0, w2a_ref[...], preferred_element_type=jnp.float32)
        + jnp.dot(tap1, w2b_ref[...], preferred_element_type=jnp.float32)
        + b2_ref[...], 0.0)                                          # (BL2, C2)
    s2[pl.ds(0, BL2), :] = h2

    # ---- maxpool2: one pooled value, rows stay in (batch, position) order ---
    p2 = jnp.maximum(s2[pl.ds(0, BL4, stride=2), :],
                     s2[pl.ds(1, BL4, stride=2), :])                 # (BL4, C2)
    s2[pl.ds(0, BL4), :] = p2                                        # reuse s2 as pooled buffer

    # ---- flatten to (B, F_IN): column index l*C2 + c matches the pre-permuted
    # fc1 weight rows (torch's channel-major flatten folded into the weights) --
    for l in range(L4):
        s3[:, pl.ds(l * C2, C2)] = s2[pl.ds(l, B, stride=L4), :]     # (B, C2) block

    # ---- fc1 + ReLU (single dot), fc2 + ReLU, fc3 ---------------------------
    h = jnp.maximum(
        jnp.dot(s3[...], fw1_ref[...], preferred_element_type=jnp.float32)
        + fb1_ref[...], 0.0)                                         # (B, H1)
    h = jnp.maximum(
        jnp.dot(h, fw2_ref[...], preferred_element_type=jnp.float32)
        + fb2_ref[...], 0.0)                                         # (B, H2)
    out_ref[...] = (
        jnp.dot(h, fw3_ref[...], preferred_element_type=jnp.float32)
        + fb3_ref[...])                                              # (B, N_OUT)


def fused_forward(xi, w1a, w1b, b1, w2a, w2b, b2,
                  fw1k, fb1, fw2t, fb2, fw3t, fb3):
    def full(shape):
        return pl.BlockSpec(shape, lambda i, _s=shape: (0,) * len(_s))

    return pl.pallas_call(
        fused_kernel,
        out_shape=jax.ShapeDtypeStruct((B, N_OUT), jnp.float32),
        grid=(1,),
        in_specs=[
            full((BL, N_CHARS)),
            full((N_CHARS, C1)), full((N_CHARS, C1)), full((1, C1)),
            full((C1, C2)), full((C1, C2)), full((1, C2)),
            full((F_IN, H1)), full((1, H1)),
            full((H1, H2)), full((1, H2)),
            full((H2, N_OUT)), full((1, N_OUT)),
        ],
        out_specs=pl.BlockSpec((B, N_OUT), lambda i: (0, 0)),
        scratch_shapes=[
            pltpu.VMEM((BL + 8, C1), jnp.float32),   # conv1 shift buffer / activations
            pltpu.VMEM((BL2, C2), jnp.float32),      # conv2 activations / pooled buffer
            pltpu.VMEM((B, F_IN), jnp.float32),      # flattened fc1 activation
        ],
        compiler_params=pltpu.CompilerParams(
            dimension_semantics=("arbitrary",)),
    )(xi, w1a, w1b, b1, w2a, w2b, b2, fw1k, fb1, fw2t, fb2, fw3t, fb3)


# --------------- one-time weight reformatting (outside the per-call jit) -----
def prepare_params(params):
    """Done once at parameter load/update time; NOT on the forward path."""
    (cw1, cb1, cw2, cb2, fw1, fb1, fw2, fb2, fw3, fb3) = params
    w1a, w1b = cw1[:, :, 0].T, cw1[:, :, 1].T          # (N_CHARS, C1) each
    w2a, w2b = cw2[:, :, 0].T, cw2[:, :, 1].T          # (C1, C2) each
    # fold torch's channel-major flatten (index = c*L4 + l) into fc1's rows so
    # the kernel consumes pooled blocks in (l, c) column order
    fw1k = fw1.reshape(H1, C2, L4).transpose(0, 2, 1).reshape(H1, F_IN).T
    return (w1a, w1b, cb1[None, :], w2a, w2b, cb2[None, :],
            fw1k, fb1[None, :], fw2.T, fb2[None, :], fw3.T, fb3[None, :])


# ------------------------- per-call wrapper -----------------------------------
@jax.jit
def cnn_ground_forward(x, kparams):
    """x: (B, SEQ_LEN, N_CHARS) float32; kparams: output of prepare_params."""
    xi = x.reshape(BL, N_CHARS)          # fold batch into matmul rows (metadata-only)
    return fused_forward(xi, *kparams)


# ------------------------- pure-JAX reference (for validation) ---------------
def ref_forward(x, params):
    (cw1, cb1, cw2, cb2, fw1, fb1, fw2, fb2, fw3, fb3) = params

    def conv1d_same_k2(h, w, b):            # h (B,L,Cin), w (Cout,Cin,2)
        h1 = jnp.concatenate([h[:, 1:, :], jnp.zeros_like(h[:, :1, :])], axis=1)
        return h @ w[:, :, 0].T + h1 @ w[:, :, 1].T + b

    def maxpool2(h):
        Bx, Lx, C = h.shape
        return h.reshape(Bx, Lx // 2, 2, C).max(axis=2)

    h = maxpool2(jnp.maximum(conv1d_same_k2(x, cw1, cb1), 0.0))
    h = maxpool2(jnp.maximum(conv1d_same_k2(h, cw2, cb2), 0.0))
    hf = jnp.transpose(h, (0, 2, 1)).reshape(x.shape[0], -1)   # torch NCL flatten
    hf = jnp.maximum(hf @ fw1.T + fb1, 0.0)
    hf = jnp.maximum(hf @ fw2.T + fb2, 0.0)
    return hf @ fw3.T + fb3


# ------------------------- deterministic parameter init ----------------------
def init_params(key):
    ks = jax.random.split(key, 10)

    def xavier(k, shape, fan_in, fan_out):
        bound = float(np.sqrt(6.0 / (fan_in + fan_out)))
        return jax.random.uniform(k, shape, jnp.float32, -bound, bound)

    def linear(kw, kb, out_f, in_f):
        bound = float(1.0 / np.sqrt(in_f))
        w = jax.random.uniform(kw, (out_f, in_f), jnp.float32, -bound, bound)
        b = jax.random.uniform(kb, (out_f,), jnp.float32, -bound, bound)
        return w, b

    cw1 = xavier(ks[0], (C1, N_CHARS, POOL_W), N_CHARS * POOL_W, C1 * POOL_W)
    cb1 = jax.random.uniform(ks[1], (C1,), jnp.float32, -0.1, 0.1)
    cw2 = xavier(ks[2], (C2, C1, POOL_W), C1 * POOL_W, C2 * POOL_W)
    cb2 = jax.random.uniform(ks[3], (C2,), jnp.float32, -0.1, 0.1)
    fw1, fb1 = linear(ks[4], ks[5], H1, F_IN)
    fw2, fb2 = linear(ks[6], ks[7], H2, H1)
    fw3, fb3 = linear(ks[8], ks[9], N_OUT, H2)
    return (cw1, cb1, cw2, cb2, fw1, fb1, fw2, fb2, fw3, fb3)


if __name__ == "__main__":
    key = jax.random.PRNGKey(0)
    kx, kp = jax.random.split(key)
    x = jax.random.normal(kx, (BATCH, SEQ_LEN, N_CHARS), jnp.float32)
    params = init_params(kp)
    kparams = prepare_params(params)          # one-time weight reformatting

    out = jax.block_until_ready(cnn_ground_forward(x, kparams))
    ref = jax.block_until_ready(ref_forward(x, params))

    assert out.shape == (BATCH, N_OUT)
    np.testing.assert_allclose(np.asarray(out), np.asarray(ref),
                               rtol=1e-4, atol=1e-4)
    print("KERNEL_OK")
</pallas_src>

<mosaic_0001>
module attributes {stable_mosaic.version = 11 : i64} {
  func.func @fused_kernel(%arg0: i32, %arg1: memref<64x20xf32, #tpu.memory_space<vmem>>, %arg2: memref<20x12xf32, #tpu.memory_space<vmem>>, %arg3: memref<20x12xf32, #tpu.memory_space<vmem>>, %arg4: memref<1x12xf32, #tpu.memory_space<vmem>>, %arg5: memref<12x6xf32, #tpu.memory_space<vmem>>, %arg6: memref<12x6xf32, #tpu.memory_space<vmem>>, %arg7: memref<1x6xf32, #tpu.memory_space<vmem>>, %arg8: memref<48x64xf32, #tpu.memory_space<vmem>>, %arg9: memref<1x64xf32, #tpu.memory_space<vmem>>, %arg10: memref<64x32xf32, #tpu.memory_space<vmem>>, %arg11: memref<1x32xf32, #tpu.memory_space<vmem>>, %arg12: memref<32x2xf32, #tpu.memory_space<vmem>>, %arg13: memref<1x2xf32, #tpu.memory_space<vmem>>, %arg14: memref<2x2xf32, #tpu.memory_space<vmem>>, %arg15: memref<72x12xf32, #tpu.memory_space<vmem>>, %arg16: memref<32x6xf32, #tpu.memory_space<vmem>>, %arg17: memref<2x48xf32, #tpu.memory_space<vmem>>) attributes {dimension_semantics = [#tpu.dimension_semantics<arbitrary>], iteration_bounds = array<i64: 1>, scalar_prefetch = 0 : i64, scratch_operands = 3 : i64, tpu.core_type = #tpu.core_type<tc>, window_params = [{pipeline_mode = #tpu.pipeline_mode<synchronous>, transform_indices = @transform_0, window_bounds = array<i64: 64, 20>}, {pipeline_mode = #tpu.pipeline_mode<synchronous>, transform_indices = @transform_1, window_bounds = array<i64: 20, 12>}, {pipeline_mode = #tpu.pipeline_mode<synchronous>, transform_indices = @transform_2, window_bounds = array<i64: 20, 12>}, {pipeline_mode = #tpu.pipeline_mode<synchronous>, transform_indices = @transform_3, window_bounds = array<i64: 1, 12>}, {pipeline_mode = #tpu.pipeline_mode<synchronous>, transform_indices = @transform_4, window_bounds = array<i64: 12, 6>}, {pipeline_mode = #tpu.pipeline_mode<synchronous>, transform_indices = @transform_5, window_bounds = array<i64: 12, 6>}, {pipeline_mode = #tpu.pipeline_mode<synchronous>, transform_indices = @transform_6, window_bounds = array<i64: 1, 6>}, {pipeline_mode = #tpu.pipeline_mode<synchronous>, transform_indices = @transform_7, window_bounds = array<i64: 48, 64>}, {pipeline_mode = #tpu.pipeline_mode<synchronous>, transform_indices = @transform_8, window_bounds = array<i64: 1, 64>}, {pipeline_mode = #tpu.pipeline_mode<synchronous>, transform_indices = @transform_9, window_bounds = array<i64: 64, 32>}, {pipeline_mode = #tpu.pipeline_mode<synchronous>, transform_indices = @transform_10, window_bounds = array<i64: 1, 32>}, {pipeline_mode = #tpu.pipeline_mode<synchronous>, transform_indices = @transform_11, window_bounds = array<i64: 32, 2>}, {pipeline_mode = #tpu.pipeline_mode<synchronous>, transform_indices = @transform_12, window_bounds = array<i64: 1, 2>}, {pipeline_mode = #tpu.pipeline_mode<synchronous>, transform_indices = @transform_13, window_bounds = array<i64: 2, 2>}]} {
    %c0 = arith.constant 0 : index
    %c0_0 = arith.constant 0 : index
    %0 = vector.load %arg1[%c0, %c0_0] : memref<64x20xf32, #tpu.memory_space<vmem>>, vector<64x20xf32>
    %c0_1 = arith.constant 0 : index
    %c0_2 = arith.constant 0 : index
    %1 = vector.load %arg2[%c0_1, %c0_2] : memref<20x12xf32, #tpu.memory_space<vmem>>, vector<20x12xf32>
    %cst = arith.constant dense<0.000000e+00> : vector<64x12xf32>
    %2 = tpu.matmul %0, %1, %cst {dimension_numbers = #tpu.dot_dimension_numbers<[1], [0], [0], [1], [0, 0, 1, 1], [], []>} : vector<64x20xf32>, vector<20x12xf32>, vector<64x12xf32> -> vector<64x12xf32>
    %c0_3 = arith.constant 0 : index
    %c0_4 = arith.constant 0 : index
    %3 = vector.load %arg3[%c0_3, %c0_4] : memref<20x12xf32, #tpu.memory_space<vmem>>, vector<20x12xf32>
    %cst_5 = arith.constant dense<0.000000e+00> : vector<64x12xf32>
    %4 = tpu.matmul %0, %3, %cst_5 {dimension_numbers = #tpu.dot_dimension_numbers<[1], [0], [0], [1], [0, 0, 1, 1], [], []>} : vector<64x20xf32>, vector<20x12xf32>, vector<64x12xf32> -> vector<64x12xf32>
    %cst_6 = arith.constant 0.000000e+00 : f32
    %5 = vector.broadcast %cst_6 : f32 to vector<8x12xf32>
    %c64 = arith.constant 64 : index
    %c0_7 = arith.constant 0 : index
    %6 = vector.load %arg15[%c64, %c0_7] : memref<72x12xf32, #tpu.memory_space<vmem>>, vector<8x12xf32>
    tpu.vector_store %arg15[%c64, %c0_7], %5 {strides = array<i32>} : memref<72x12xf32, #tpu.memory_space<vmem>>, vector<8x12xf32>,
    %c0_8 = arith.constant 0 : index
    %c0_9 = arith.constant 0 : index
    %7 = vector.load %arg15[%c0_8, %c0_9] : memref<72x12xf32, #tpu.memory_space<vmem>>, vector<64x12xf32>
    tpu.vector_store %arg15[%c0_8, %c0_9], %4 {strides = array<i32>} : memref<72x12xf32, #tpu.memory_space<vmem>>, vector<64x12xf32>,
    %c1 = arith.constant 1 : index
    %c0_10 = arith.constant 0 : index
    %8 = vector.load %arg15[%c1, %c0_10] : memref<72x12xf32, #tpu.memory_space<vmem>>, vector<64x12xf32>
    %9 = tpu.iota {dimensions = array<i32: 0>} : vector<64x12xi32>
    %c32_i32 = arith.constant 32 : i32
    %c0_i32 = arith.constant 0 : i32
    %10 = arith.cmpi eq, %c32_i32, %c0_i32 : i32
    %c1_i32 = arith.constant 1 : i32
    %11 = arith.select %10, %c1_i32, %c32_i32 : i32
    %12 = vector.broadcast %11 : i32 to vector<64x12xi32>
    %13 = arith.remsi %9, %12 : vector<64x12xi32>
    %c0_i32_11 = arith.constant 0 : i32
    %14 = vector.broadcast %c0_i32_11 : i32 to vector<64x12xi32>
    %15 = arith.cmpi ne, %13, %14 : vector<64x12xi32>
    %c0_i32_12 = arith.constant 0 : i32
    %16 = vector.broadcast %c0_i32_12 : i32 to vector<64x12xi32>
    %17 = arith.cmpi slt, %13, %16 : vector<64x12xi32>
    %c0_i32_13 = arith.constant 0 : i32
    %18 = arith.cmpi slt, %11, %c0_i32_13 : i32
    %19 = vector.broadcast %18 : i1 to vector<64x12xi1>
    %20 = vector.broadcast %19 : vector<64x12xi1> to vector<64x12xi1>
    %21 = arith.xori %17, %20 : vector<64x12xi1>
    %22 = arith.andi %21, %15 : vector<64x12xi1>
    %23 = vector.broadcast %11 : i32 to vector<64x12xi32>
    %24 = arith.addi %13, %23 : vector<64x12xi32>
    %25 = arith.select %22, %24, %13 : vector<64x12xi1>, vector<64x12xi32>
    %c31_i32 = arith.constant 31 : i32
    %26 = vector.broadcast %c31_i32 : i32 to vector<64x12xi32>
    %27 = arith.cmpi eq, %25, %26 : vector<64x12xi32>
    %cst_14 = arith.constant 0.000000e+00 : f32
    %28 = vector.broadcast %cst_14 : f32 to vector<64x12xf32>
    %29 = arith.select %27, %28, %8 : vector<64x12xi1>, vector<64x12xf32>
    %30 = arith.addf %2, %29 : vector<64x12xf32>
    %c0_15 = arith.constant 0 : index
    %c0_16 = arith.constant 0 : index
    %31 = vector.load %arg4[%c0_15, %c0_16] : memref<1x12xf32, #tpu.memory_space<vmem>>, vector<1x12xf32>
    %32 = vector.broadcast %31 : vector<1x12xf32> to vector<64x12xf32>
    %33 = arith.addf %30, %32 : vector<64x12xf32>
    %cst_17 = arith.constant 0.000000e+00 : f32
    %34 = vector.broadcast %cst_17 : f32 to vector<64x12xf32>
    %35 = arith.maximumf %33, %34 : vector<64x12xf32>
    %c0_18 = arith.constant 0 : index
    %c0_19 = arith.constant 0 : index
    %36 = vector.load %arg15[%c0_18, %c0_19] : memref<72x12xf32, #tpu.memory_space<vmem>>, vector<64x12xf32>
    tpu.vector_store %arg15[%c0_18, %c0_19], %35 {strides = array<i32>} : memref<72x12xf32, #tpu.memory_space<vmem>>, vector<64x12xf32>,
    %c0_20 = arith.constant 0 : index
    %c0_21 = arith.constant 0 : index
    %37 = tpu.strided_load %arg15[%c0_20, %c0_21] {strides = array<i32: 2, 1>} : memref<72x12xf32, #tpu.memory_space<vmem>>, vector<32x12xf32>
    %c1_22 = arith.constant 1 : index
    %c0_23 = arith.constant 0 : index
    %38 = tpu.strided_load %arg15[%c1_22, %c0_23] {strides = array<i32: 2, 1>} : memref<72x12xf32, #tpu.memory_space<vmem>>, vector<32x12xf32>
    %39 = arith.maximumf %37, %38 : vector<32x12xf32>
    %c2 = arith.constant 2 : index
    %c0_24 = arith.constant 0 : index
    %40 = tpu.strided_load %arg15[%c2, %c0_24] {strides = array<i32: 2, 1>} : memref<72x12xf32, #tpu.memory_space<vmem>>, vector<32x12xf32>
    %c3 = arith.constant 3 : index
    %c0_25 = arith.constant 0 : index
    %41 = tpu.strided_load %arg15[%c3, %c0_25] {strides = array<i32: 2, 1>} : memref<72x12xf32, #tpu.memory_space<vmem>>, vector<32x12xf32>
    %42 = arith.maximumf %40, %41 : vector<32x12xf32>
    %43 = tpu.iota {dimensions = array<i32: 0>} : vector<32x12xi32>
    %c16_i32 = arith.constant 16 : i32
    %c0_i32_26 = arith.constant 0 : i32
    %44 = arith.cmpi eq, %c16_i32, %c0_i32_26 : i32
    %c1_i32_27 = arith.constant 1 : i32
    %45 = arith.select %44, %c1_i32_27, %c16_i32 : i32
    %46 = vector.broadcast %45 : i32 to vector<32x12xi32>
    %47 = arith.remsi %43, %46 : vector<32x12xi32>
    %c0_i32_28 = arith.constant 0 : i32
    %48 = vector.broadcast %c0_i32_28 : i32 to vector<32x12xi32>
    %49 = arith.cmpi ne, %47, %48 : vector<32x12xi32>
    %c0_i32_29 = arith.constant 0 : i32
    %50 = vector.broadcast %c0_i32_29 : i32 to vector<32x12xi32>
    %51 = arith.cmpi slt, %47, %50 : vector<32x12xi32>
    %c0_i32_30 = arith.constant 0 : i32
    %52 = arith.cmpi slt, %45, %c0_i32_30 : i32
    %53 = vector.broadcast %52 : i1 to vector<32x12xi1>
    %54 = vector.broadcast %53 : vector<32x12xi1> to vector<32x12xi1>
    %55 = arith.xori %51, %54 : vector<32x12xi1>
    %56 = arith.andi %55, %49 : vector<32x12xi1>
    %57 = vector.broadcast %45 : i32 to vector<32x12xi32>
    %58 = arith.addi %47, %57 : vector<32x12xi32>
    %59 = arith.select %56, %58, %47 : vector<32x12xi1>, vector<32x12xi32>
    %c15_i32 = arith.constant 15 : i32
    %60 = vector.broadcast %c15_i32 : i32 to vector<32x12xi32>
    %61 = arith.cmpi eq, %59, %60 : vector<32x12xi32>
    %cst_31 = arith.constant 0.000000e+00 : f32
    %62 = vector.broadcast %cst_31 : f32 to vector<32x12xf32>
    %63 = arith.select %61, %62, %42 : vector<32x12xi1>, vector<32x12xf32>
    %c0_32 = arith.constant 0 : index
    %c0_33 = arith.constant 0 : index
    %64 = vector.load %arg5[%c0_32, %c0_33] : memref<12x6xf32, #tpu.memory_space<vmem>>, vector<12x6xf32>
    %cst_34 = arith.constant dense<0.000000e+00> : vector<32x6xf32>
    %65 = tpu.matmul %39, %64, %cst_34 {dimension_numbers = #tpu.dot_dimension_numbers<[1], [0], [0], [1], [0, 0, 1, 1], [], []>} : vector<32x12xf32>, vector<12x6xf32>, vector<32x6xf32> -> vector<32x6xf32>
    %c0_35 = arith.constant 0 : index
    %c0_36 = arith.constant 0 : index
    %66 = vector.load %arg6[%c0_35, %c0_36] : memref<12x6xf32, #tpu.memory_space<vmem>>, vector<12x6xf32>
    %cst_37 = arith.constant dense<0.000000e+00> : vector<32x6xf32>
    %67 = tpu.matmul %63, %66, %cst_37 {dimension_numbers = #tpu.dot_dimension_numbers<[1], [0], [0], [1], [0, 0, 1, 1], [], []>} : vector<32x12xf32>, vector<12x6xf32>, vector<32x6xf32> -> vector<32x6xf32>
    %68 = arith.addf %65, %67 : vector<32x6xf32>
    %c0_38 = arith.constant 0 : index
    %c0_39 = arith.constant 0 : index
    %69 = vector.load %arg7[%c0_38, %c0_39] : memref<1x6xf32, #tpu.memory_space<vmem>>, vector<1x6xf32>
    %70 = vector.broadcast %69 : vector<1x6xf32> to vector<32x6xf32>
    %71 = arith.addf %68, %70 : vector<32x6xf32>
    %cst_40 = arith.constant 0.000000e+00 : f32
    %72 = vector.broadcast %cst_40 : f32 to vector<32x6xf32>
    %73 = arith.maximumf %71, %72 : vector<32x6xf32>
    %c0_41 = arith.constant 0 : index
    %c0_42 = arith.constant 0 : index
    %74 = vector.load %arg16[%c0_41, %c0_42] : memref<32x6xf32, #tpu.memory_space<vmem>>, vector<32x6xf32>
    tpu.vector_store %arg16[%c0_41, %c0_42], %73 {strides = array<i32>} : memref<32x6xf32, #tpu.memory_space<vmem>>, vector<32x6xf32>,
    %c0_43 = arith.constant 0 : index
    %c0_44 = arith.constant 0 : index
    %75 = tpu.strided_load %arg16[%c0_43, %c0_44] {strides = array<i32: 2, 1>} : memref<32x6xf32, #tpu.memory_space<vmem>>, vector<16x6xf32>
    %c1_45 = arith.constant 1 : index
    %c0_46 = arith.constant 0 : index
    %76 = tpu.strided_load %arg16[%c1_45, %c0_46] {strides = array<i32: 2, 1>} : memref<32x6xf32, #tpu.memory_space<vmem>>, vector<16x6xf32>
    %77 = arith.maximumf %75, %76 : vector<16x6xf32>
    %c0_47 = arith.constant 0 : index
    %c0_48 = arith.constant 0 : index
    %78 = vector.load %arg16[%c0_47, %c0_48] : memref<32x6xf32, #tpu.memory_space<vmem>>, vector<16x6xf32>
    tpu.vector_store %arg16[%c0_47, %c0_48], %77 {strides = array<i32>} : memref<32x6xf32, #tpu.memory_space<vmem>>, vector<16x6xf32>,
    %c0_49 = arith.constant 0 : index
    %c0_50 = arith.constant 0 : index
    %79 = tpu.strided_load %arg16[%c0_49, %c0_50] {strides = array<i32: 8, 1>} : memref<32x6xf32, #tpu.memory_space<vmem>>, vector<2x6xf32>
    %c0_51 = arith.constant 0 : index
    %c0_52 = arith.constant 0 : index
    %80 = vector.load %arg17[%c0_51, %c0_52] : memref<2x48xf32, #tpu.memory_space<vmem>>, vector<2x6xf32>
    tpu.vector_store %arg17[%c0_51, %c0_52], %79 {strides = array<i32>} : memref<2x48xf32, #tpu.memory_space<vmem>>, vector<2x6xf32>,
    %c1_53 = arith.constant 1 : index
    %c0_54 = arith.constant 0 : index
    %81 = tpu.strided_load %arg16[%c1_53, %c0_54] {strides = array<i32: 8, 1>} : memref<32x6xf32, #tpu.memory_space<vmem>>, vector<2x6xf32>
    %c0_55 = arith.constant 0 : index
    %c6 = arith.constant 6 : index
    %82 = vector.load %arg17[%c0_55, %c6] : memref<2x48xf32, #tpu.memory_space<vmem>>, vector<2x6xf32>
    tpu.vector_store %arg17[%c0_55, %c6], %81 {strides = array<i32>} : memref<2x48xf32, #tpu.memory_space<vmem>>, vector<2x6xf32>,
    %c2_56 = arith.constant 2 : index
    %c0_57 = arith.constant 0 : index
    %83 = tpu.strided_load %arg16[%c2_56, %c0_57] {strides = array<i32: 8, 1>} : memref<32x6xf32, #tpu.memory_space<vmem>>, vector<2x6xf32>
    %c0_58 = arith.constant 0 : index
    %c12 = arith.constant 12 : index
    %84 = vector.load %arg17[%c0_58, %c12] : memref<2x48xf32, #tpu.memory_space<vmem>>, vector<2x6xf32>
    tpu.vector_store %arg17[%c0_58, %c12], %83 {strides = array<i32>} : memref<2x48xf32, #tpu.memory_space<vmem>>, vector<2x6xf32>,
    %c3_59 = arith.constant 3 : index
    %c0_60 = arith.constant 0 : index
    %85 = tpu.strided_load %arg16[%c3_59, %c0_60] {strides = array<i32: 8, 1>} : memref<32x6xf32, #tpu.memory_space<vmem>>, vector<2x6xf32>
    %c0_61 = arith.constant 0 : index
    %c18 = arith.constant 18 : index
    %86 = vector.load %arg17[%c0_61, %c18] : memref<2x48xf32, #tpu.memory_space<vmem>>, vector<2x6xf32>
    tpu.vector_store %arg17[%c0_61, %c18], %85 {strides = array<i32>} : memref<2x48xf32, #tpu.memory_space<vmem>>, vector<2x6xf32>,
    %c4 = arith.constant 4 : index
    %c0_62 = arith.constant 0 : index
    %87 = tpu.strided_load %arg16[%c4, %c0_62] {strides = array<i32: 8, 1>} : memref<32x6xf32, #tpu.memory_space<vmem>>, vector<2x6xf32>
    %c0_63 = arith.constant 0 : index
    %c24 = arith.constant 24 : index
    %88 = vector.load %arg17[%c0_63, %c24] : memref<2x48xf32, #tpu.memory_space<vmem>>, vector<2x6xf32>
    tpu.vector_store %arg17[%c0_63, %c24], %87 {strides = array<i32>} : memref<2x48xf32, #tpu.memory_space<vmem>>, vector<2x6xf32>,
    %c5 = arith.constant 5 : index
    %c0_64 = arith.constant 0 : index
    %89 = tpu.strided_load %arg16[%c5, %c0_64] {strides = array<i32: 8, 1>} : memref<32x6xf32, #tpu.memory_space<vmem>>, vector<2x6xf32>
    %c0_65 = arith.constant 0 : index
    %c30 = arith.constant 30 : index
    %90 = vector.load %arg17[%c0_65, %c30] : memref<2x48xf32, #tpu.memory_space<vmem>>, vector<2x6xf32>
    tpu.vector_store %arg17[%c0_65, %c30], %89 {strides = array<i32>} : memref<2x48xf32, #tpu.memory_space<vmem>>, vector<2x6xf32>,
    %c6_66 = arith.constant 6 : index
    %c0_67 = arith.constant 0 : index
    %91 = tpu.strided_load %arg16[%c6_66, %c0_67] {strides = array<i32: 8, 1>} : memref<32x6xf32, #tpu.memory_space<vmem>>, vector<2x6xf32>
    %c0_68 = arith.constant 0 : index
    %c36 = arith.constant 36 : index
    %92 = vector.load %arg17[%c0_68, %c36] : memref<2x48xf32, #tpu.memory_space<vmem>>, vector<2x6xf32>
    tpu.vector_store %arg17[%c0_68, %c36], %91 {strides = array<i32>} : memref<2x48xf32, #tpu.memory_space<vmem>>, vector<2x6xf32>,
    %c7 = arith.constant 7 : index
    %c0_69 = arith.constant 0 : index
    %93 = tpu.strided_load %arg16[%c7, %c0_69] {strides = array<i32: 8, 1>} : memref<32x6xf32, #tpu.memory_space<vmem>>, vector<2x6xf32>
    %c0_70 = arith.constant 0 : index
    %c42 = arith.constant 42 : index
    %94 = vector.load %arg17[%c0_70, %c42] : memref<2x48xf32, #tpu.memory_space<vmem>>, vector<2x6xf32>
    tpu.vector_store %arg17[%c0_70, %c42], %93 {strides = array<i32>} : memref<2x48xf32, #tpu.memory_space<vmem>>, vector<2x6xf32>,
    %c0_71 = arith.constant 0 : index
    %c0_72 = arith.constant 0 : index
    %95 = vector.load %arg17[%c0_71, %c0_72] : memref<2x48xf32, #tpu.memory_space<vmem>>, vector<2x48xf32>
    %c0_73 = arith.constant 0 : index
    %c0_74 = arith.constant 0 : index
    %96 = vector.load %arg8[%c0_73, %c0_74] : memref<48x64xf32, #tpu.memory_space<vmem>>, vector<48x64xf32>
    %cst_75 = arith.constant dense<0.000000e+00> : vector<2x64xf32>
    %97 = tpu.matmul %95, %96, %cst_75 {dimension_numbers = #tpu.dot_dimension_numbers<[1], [0], [0], [1], [0, 0, 1, 1], [], []>} : vector<2x48xf32>, vector<48x64xf32>, vector<2x64xf32> -> vector<2x64xf32>
    %c0_76 = arith.constant 0 : index
    %c0_77 = arith.constant 0 : index
    %98 = vector.load %arg9[%c0_76, %c0_77] : memref<1x64xf32, #tpu.memory_space<vmem>>, vector<1x64xf32>
    %99 = vector.broadcast %98 : vector<1x64xf32> to vector<2x64xf32>
    %100 = arith.addf %97, %99 : vector<2x64xf32>
    %cst_78 = arith.constant 0.000000e+00 : f32
    %101 = vector.broadcast %cst_78 : f32 to vector<2x64xf32>
    %102 = arith.maximumf %100, %101 : vector<2x64xf32>
    %c0_79 = arith.constant 0 : index
    %c0_80 = arith.constant 0 : index
    %103 = vector.load %arg10[%c0_79, %c0_80] : memref<64x32xf32, #tpu.memory_space<vmem>>, vector<64x32xf32>
    %cst_81 = arith.constant dense<0.000000e+00> : vector<2x32xf32>
    %104 = tpu.matmul %102, %103, %cst_81 {dimension_numbers = #tpu.dot_dimension_numbers<[1], [0], [0], [1], [0, 0, 1, 1], [], []>} : vector<2x64xf32>, vector<64x32xf32>, vector<2x32xf32> -> vector<2x32xf32>
    %c0_82 = arith.constant 0 : index
    %c0_83 = arith.constant 0 : index
    %105 = vector.load %arg11[%c0_82, %c0_83] : memref<1x32xf32, #tpu.memory_space<vmem>>, vector<1x32xf32>
    %106 = vector.broadcast %105 : vector<1x32xf32> to vector<2x32xf32>
    %107 = arith.addf %104, %106 : vector<2x32xf32>
    %cst_84 = arith.constant 0.000000e+00 : f32
    %108 = vector.broadcast %cst_84 : f32 to vector<2x32xf32>
    %109 = arith.maximumf %107, %108 : vector<2x32xf32>
    %c0_85 = arith.constant 0 : index
    %c0_86 = arith.constant 0 : index
    %110 = vector.load %arg12[%c0_85, %c0_86] : memref<32x2xf32, #tpu.memory_space<vmem>>, vector<32x2xf32>
    %cst_87 = arith.constant dense<0.000000e+00> : vector<2x2xf32>
    %111 = tpu.matmul %109, %110, %cst_87 {dimension_numbers = #tpu.dot_dimension_numbers<[1], [0], [0], [1], [0, 0, 1, 1], [], []>} : vector<2x32xf32>, vector<32x2xf32>, vector<2x2xf32> -> vector<2x2xf32>
    %c0_88 = arith.constant 0 : index
    %c0_89 = arith.constant 0 : index
    %112 = vector.load %arg13[%c0_88, %c0_89] : memref<1x2xf32, #tpu.memory_space<vmem>>, vector<1x2xf32>
    %113 = vector.broadcast %112 : vector<1x2xf32> to vector<2x2xf32>
    %114 = arith.addf %111, %113 : vector<2x2xf32>
    %c0_90 = arith.constant 0 : index
    %c0_91 = arith.constant 0 : index
    %115 = vector.load %arg14[%c0_90, %c0_91] : memref<2x2xf32, #tpu.memory_space<vmem>>, vector<2x2xf32>
    tpu.vector_store %arg14[%c0_90, %c0_91], %114 {strides = array<i32>} : memref<2x2xf32, #tpu.memory_space<vmem>>, vector<2x2xf32>,
    return
  }
  func.func @transform_0(%arg0: i32) -> (i32, i32) {
    %c0_i32 = arith.constant 0 : i32
    %c0_i32_0 = arith.constant 0 : i32
    %c0_i32_1 = arith.constant 0 : i32
    return %c0_i32, %c0_i32_0 : i32, i32
  }
  func.func @transform_1(%arg0: i32) -> (i32, i32) {
    %c0_i32 = arith.constant 0 : i32
    %c0_i32_0 = arith.constant 0 : i32
    %c0_i32_1 = arith.constant 0 : i32
    return %c0_i32, %c0_i32_0 : i32, i32
  }
  func.func @transform_2(%arg0: i32) -> (i32, i32) {
    %c0_i32 = arith.constant 0 : i32
    %c0_i32_0 = arith.constant 0 : i32
    %c0_i32_1 = arith.constant 0 : i32
    return %c0_i32, %c0_i32_0 : i32, i32
  }
  func.func @transform_3(%arg0: i32) -> (i32, i32) {
    %c0_i32 = arith.constant 0 : i32
    %c0_i32_0 = arith.constant 0 : i32
    %c0_i32_1 = arith.constant 0 : i32
    return %c0_i32, %c0_i32_0 : i32, i32
  }
  func.func @transform_4(%arg0: i32) -> (i32, i32) {
    %c0_i32 = arith.constant 0 : i32
    %c0_i32_0 = arith.constant 0 : i32
    %c0_i32_1 = arith.constant 0 : i32
    return %c0_i32, %c0_i32_0 : i32, i32
  }
  func.func @transform_5(%arg0: i32) -> (i32, i32) {
    %c0_i32 = arith.constant 0 : i32
    %c0_i32_0 = arith.constant 0 : i32
    %c0_i32_1 = arith.constant 0 : i32
    return %c0_i32, %c0_i32_0 : i32, i32
  }
  func.func @transform_6(%arg0: i32) -> (i32, i32) {
    %c0_i32 = arith.constant 0 : i32
    %c0_i32_0 = arith.constant 0 : i32
    %c0_i32_1 = arith.constant 0 : i32
    return %c0_i32, %c0_i32_0 : i32, i32
  }
  func.func @transform_7(%arg0: i32) -> (i32, i32) {
    %c0_i32 = arith.constant 0 : i32
    %c0_i32_0 = arith.constant 0 : i32
    %c0_i32_1 = arith.constant 0 : i32
    return %c0_i32, %c0_i32_0 : i32, i32
  }
  func.func @transform_8(%arg0: i32) -> (i32, i32) {
    %c0_i32 = arith.constant 0 : i32
    %c0_i32_0 = arith.constant 0 : i32
    %c0_i32_1 = arith.constant 0 : i32
    return %c0_i32, %c0_i32_0 : i32, i32
  }
  func.func @transform_9(%arg0: i32) -> (i32, i32) {
    %c0_i32 = arith.constant 0 : i32
    %c0_i32_0 = arith.constant 0 : i32
    %c0_i32_1 = arith.constant 0 : i32
    return %c0_i32, %c0_i32_0 : i32, i32
  }
  func.func @transform_10(%arg0: i32) -> (i32, i32) {
    %c0_i32 = arith.constant 0 : i32
    %c0_i32_0 = arith.constant 0 : i32
    %c0_i32_1 = arith.constant 0 : i32
    return %c0_i32, %c0_i32_0 : i32, i32
  }
  func.func @transform_11(%arg0: i32) -> (i32, i32) {
    %c0_i32 = arith.constant 0 : i32
    %c0_i32_0 = arith.constant 0 : i32
    %c0_i32_1 = arith.constant 0 : i32
    return %c0_i32, %c0_i32_0 : i32, i32
  }
  func.func @transform_12(%arg0: i32) -> (i32, i32) {
    %c0_i32 = arith.constant 0 : i32
    %c0_i32_0 = arith.constant 0 : i32
    %c0_i32_1 = arith.constant 0 : i32
    return %c0_i32, %c0_i32_0 : i32, i32
  }
  func.func @transform_13(%arg0: i32) -> (i32, i32) {
    %c0_i32 = arith.constant 0 : i32
    %c0_i32_0 = arith.constant 0 : i32
    %c0_i32_1 = arith.constant 0 : i32
    return %c0_i32, %c0_i32_0 : i32, i32
  }
}

</mosaic_0001>

<bundles_post_ra>
// kernel: cnn_ground_forward.1
= control target key start
LH: loop header
LB: loop body
LE: loop exit
PB: predicated region body
PF: predicated region fallthrough
CT: control target
= control target key end

     0   :  { %vm84_vm0 = vcmask 1043456   ;;  %vm59_vm1 = vcmask 162816   ;;  %s1085_s0 = inlined_call_operand.vmem [shape: f32[64,20], index: 0, kind: input, shape index: {}]   ;;  %s1086_s1 = inlined_call_operand.vmem [shape: f32[20,12], index: 1, kind: input, shape index: {}]   ;;  %s1087_s2 = inlined_call_operand.vmem [shape: f32[20,12], index: 2, kind: input, shape index: {}]   ;;  %s1088_s3 = inlined_call_operand.vmem [shape: f32[1,12], index: 3, kind: input, shape index: {}]   ;;  %s1089_s4 = inlined_call_operand.vmem [shape: f32[12,6], index: 4, kind: input, shape index: {}]   ;;  %s1090_s5 = inlined_call_operand.vmem [shape: f32[12,6], index: 5, kind: input, shape index: {}]   ;;  %s1091_s6 = inlined_call_operand.vmem [shape: f32[1,6], index: 6, kind: input, shape index: {}]   ;;  %s1092_s7 = inlined_call_operand.vmem [shape: f32[48,64], index: 7, kind: input, shape index: {}]   ;;  %s1093_s8 = inlined_call_operand.vmem [shape: f32[1,64], index: 8, kind: input, shape index: {}]   ;;  %s1094_s9 = inlined_call_operand.vmem [shape: f32[64,32], index: 9, kind: input, shape index: {}]   ;;  %s1095_s10 = inlined_call_operand.vmem [shape: f32[1,32], index: 10, kind: input, shape index: {}]   ;;  %s1096_s11 = inlined_call_operand.vmem [shape: f32[32,2], index: 11, kind: input, shape index: {}]   ;;  %s1097_s12 = inlined_call_operand.vmem [shape: f32[1,2], index: 12, kind: input, shape index: {}]   ;;  %s1098_s13 = inlined_call_operand.hbm [shape: f32[2,2], index: 13, kind: output, shape index: {}]  }
   0x1   :  { %v58_v0 = vld [vmem:[%s1087_s2 + $0x10] sm:$0xf]  ;;  %v57_v1 = vld [vmem:[%s1087_s2 + $0x8] sm:$0xff]  ;;  %v56_v4 = vld [vmem:[%s1087_s2] sm:$0xff] }
   0x2   :  { %736 = vmatpush.msk.msra.mxu0 %vm84_vm0, %v58_v0  ;;  %v55_v2 = vld [vmem:[%s1086_s1 + $0x10] sm:$0xf]  ;;  %v54_v3 = vld [vmem:[%s1086_s1 + $0x8] sm:$0xff]  ;;  %767 = vmatpush.msk.msra.mxu3 %vm84_vm0, %v58_v0  ;;  %v45_v5 = vld [vmem:[%s1085_s0] sm:$0xff] }
   0x3   :  { %745 = vmatpush.msk.msra.mxu1 %vm84_vm0, %v55_v2  ;;  %770 = vmatpush.msk.msra.mxu2 %vm84_vm0, %v55_v2  ;;  %v53_v6 = vld [vmem:[%s1086_s1] sm:$0xff] }
   0x4   :  { %102 = vmatpush.msra.mxu0 %v57_v1  ;;  %768 = vmatpush.msra.mxu3 %v57_v1 }
   0x5   :  { %285 = vmatpush.msra.mxu1 %v54_v3  ;;  %771 = vmatpush.msra.mxu2 %v54_v3 }
   0x6   :  { %103 = vmatpush.msra.mxu0 %v56_v4  ;;  %769 = vmatpush.msra.mxu3 %v56_v4 }
   0x7   :  { %18 = vsyncpa [#allocation6], 0  ;;  %737 = vmatmul.msk.f32.vlgmr.msra.gmra.mxu0 %vm59_vm1, %v45_v5  ;;  %286 = vmatpush.msra.mxu1 %v53_v6  ;;  %v46_v7 = vld [vmem:[%s1085_s0 + $0x8] sm:$0xff]  ;;  %v52_v8 = vld [vmem:[%s1085_s0 + $0x38] sm:$0xff]  ;;  %vm129_vm2 = vcmask 97280   ;;  %v813_v29 = vmov 0.0   ;;  %v147_v31 = vlaneseq }
   0x8   :  { %746 = vmatmul.msk.f32.vlgmr.msra.gmra.mxu1 %vm59_vm1, %v45_v5  ;;  %772 = vmatpush.msra.mxu2 %v53_v6  ;;  %v47_v9 = vld [vmem:[%s1085_s0 + $0x10] sm:$0xff]  ;;  %v48_v10 = vld [vmem:[%s1085_s0 + $0x18] sm:$0xff]  ;;  %v49_v11 = vld [vmem:[%s1085_s0 + $0x20] sm:$0xff]  ;;  %130 = vst.msk [vmem:[#allocation2 + $0x40] sm:$0xff] %vm129_vm2, %v813_v29  ;;  %vm539_vm7 = vcmask 48128   ;;  %vm556_vm8 = vcmask 41984  }
   0x9   :  { %744 = vmatmul.msk.f32.vlgmr.msra.gmra.mxu3 %vm59_vm1, %v52_v8  ;;  %753 = vmatmul.msk.f32.vlgmr.msra.gmra.mxu2 %vm59_vm1, %v52_v8  ;;  %v50_v12 = vld [vmem:[%s1085_s0 + $0x28] sm:$0xff]  ;;  %v51_v13 = vld [vmem:[%s1085_s0 + $0x30] sm:$0xff]  ;;  %v435_v17 = vld [vmem:[%s1089_s4] sm:$0xff]  ;;  %v148_v36 = vshrl.u32 %v147_v31, 7  ;;  %s816_s24 = smov 6   ;;  %s817_s25 = smov 36  }
   0xa   :  { %v436_v16 = vld [vmem:[%s1089_s4 + $0x8] sm:$0xf]  ;;  %v970_v21 = vld [vmem:[%s1088_s3] ss:$0 sm:$0xff]  ;;  %s818_s26 = smov 24   ;;  %s819_s27 = smov 12  }
   0xb   :  { %759 = vmatpush.msk.msrb.mxu3 %vm84_vm0, %v436_v16  ;;  %v438_v20 = vld [vmem:[%s1090_s5 + $0x8] sm:$0xf]  ;;  %v437_v22 = vld [vmem:[%s1090_s5] sm:$0xff]  ;;  %v982_v39 = vadd.s32 24, %v148_v36  ;;  %v155_v40 = vadd.s32 56, %v148_v36  ;;  %s814_s5 = smov 30  }
   0xc   :  { %754 = vmatpush.msk.msrb.mxu2 %vm84_vm0, %v438_v20  ;;  %s820_s28 = smov 42   ;;  %vm563_vm9 = vcmask 91184   ;;  %vm571_vm10 = vcmask 140384   ;;  %vm579_vm11 = vcmask 189584   ;;  %vm587_vm12 = vcmask 238784   ;;  %s821_s3 = smov [#allocation5]  }
   0xd   :  { %513 = vmatpush.msrb.mxu3 %v435_v17  ;;  %v181_v44 = vand.u32 31, %v982_v39  ;;  %v209_v47 = vand.u32 31, %v155_v40  ;;  %vm595_vm13 = vcmask 287984   ;;  %vm603_vm14 = vcmask 337184   ;;  %s725_s4 = sshll.u32 %s821_s3, 4  ;;  %s726_s4 = int_to_ptr.vmem [resolvable:$true] %s725_s4 }
   0xe   :  { %469 = vmatpush.msrb.mxu2 %v437_v22  ;;  %vm611_vm15 = vcmask 386384   ;;  %vm624_vm0 = vcmask 392192  }
   0xf   :  { %738 = vmatmul.msk.f32.gmra.mxu0 %vm59_vm1, %v46_v7  ;;  %vm255_vm3 = vcmp.eq.s32.totalorder %v181_v44, 31  ;;  %vm259_vm4 = vcmp.eq.s32.totalorder %v209_v47, 31 }
  0x10   :  { %747 = vmatmul.msk.f32.gmra.mxu1 %vm59_vm1, %v46_v7 }
  0x17   :  { %739 = vmatmul.msk.f32.gmra.mxu0 %vm59_vm1, %v47_v9 }
  0x18   :  { %748 = vmatmul.msk.f32.gmra.mxu1 %vm59_vm1, %v47_v9 }
  0x1f   :  { %740 = vmatmul.msk.f32.gmra.mxu0 %vm59_vm1, %v48_v10 }
  0x20   :  { %749 = vmatmul.msk.f32.gmra.mxu1 %vm59_vm1, %v48_v10  ;;  %v149_v10 = vadd.s32 8, %v148_v36 }
  0x27   :  { %741 = vmatmul.msk.f32.gmra.mxu0 %vm59_vm1, %v49_v11 }
  0x28   :  { %750 = vmatmul.msk.f32.gmra.mxu1 %vm59_vm1, %v49_v11 }
  0x2f   :  { %742 = vmatmul.msk.f32.gmra.mxu0 %vm59_vm1, %v50_v12 }
  0x30   :  { %751 = vmatmul.msk.f32.gmra.mxu1 %vm59_vm1, %v50_v12 }
  0x37   :  { %743 = vmatmul.msk.f32.gmra.mxu0 %vm59_vm1, %v51_v13 }
  0x38   :  { %752 = vmatmul.msk.f32.gmra.mxu1 %vm59_vm1, %v51_v13  ;;  %vm661_vm1 = vcmask 523264  }
  0x84   :  { %v105_v14 = vpop.f32.mrf.mxu0 }
  0x85   :  { %131 = vst.msk [vmem:[#allocation2] sm:$0xff] %vm129_vm2, %v105_v14  ;;  %v288_v15 = vpop.f32.mrf.mxu1 }
  0x8c   :  { %v108_v18 = vpop.f32.mrf.mxu0  ;;  %v126_v25 = vpop.f32.mrf.mxu3 }
  0x8d   :  { %132 = vst.msk [vmem:[#allocation2 + $0x8] sm:$0xff] %vm129_vm2, %v108_v18  ;;  %v291_v19 = vpop.f32.mrf.mxu1  ;;  %v309_v58 = vpop.f32.mrf.mxu2  ;;  %v390_v18 = vand.u32 15, %v149_v10 }
  0x8e   :  { %138 = vst.msk [vmem:[#allocation2 + $0x38] sm:$0xff] %vm129_vm2, %v126_v25 }
  0x8f   :  { %vm428_vm5 = vcmp.eq.s32.totalorder %v390_v18, 15  ;;  %v656_v18 = vld [vmem:[%s1094_s9 + $0x38] sm:$0xff] }
  0x90   :  { %673 = vmatpush.msra.mxu3 %v656_v18 }
  0x94   :  { %v139_v23 = vld [vmem:[#allocation2 + $0x1] sm:$0xff]  ;;  %v111_v24 = vpop.f32.mrf.mxu0 }
  0x95   :  { %v289_v26 = vadd.f32 %v288_v15, %v139_v23  ;;  %133 = vst.msk [vmem:[#allocation2 + $0x10] sm:$0xff] %vm129_vm2, %v111_v24  ;;  %v294_v27 = vpop.f32.mrf.mxu1  ;;  %v146_v52 = vld [vmem:[#allocation2 + $0x39] sm:$0xff] }
  0x96   :  { %v267_v57 = vsel %vm259_vm4, 0.0, %v146_v52 }
  0x97   :  { %v316_v28 = vadd.f32 %v970_v21, %v289_v26  ;;  %v310_v61 = vadd.f32 %v309_v58, %v267_v57 }
  0x99   :  { %v324_v30 = vmax.f32 %v316_v28, 0.0  ;;  %v323_v5 = vadd.f32 %v970_v21, %v310_v61 }
  0x9b   :  { %332 = vst.msk [vmem:[#allocation2] sm:$0xff] %vm129_vm2, %v324_v30  ;;  %v331_v8 = vmax.f32 %v323_v5, 0.0 }
  0x9c   :  { %v140_v32 = vld [vmem:[#allocation2 + $0x9] sm:$0xff]  ;;  %v114_v33 = vpop.f32.mrf.mxu0 }
  0x9d   :  { %v292_v34 = vadd.f32 %v291_v19, %v140_v32  ;;  %134 = vst.msk [vmem:[#allocation2 + $0x18] sm:$0xff] %vm129_vm2, %v114_v33  ;;  %v297_v35 = vpop.f32.mrf.mxu1 }
  0x9f   :  { %v317_v37 = vadd.f32 %v970_v21, %v292_v34 }
  0xa1   :  { %v325_v38 = vmax.f32 %v317_v37, 0.0 }
  0xa3   :  { %333 = vst.msk [vmem:[#allocation2 + $0x8] sm:$0xff] %vm129_vm2, %v325_v38 }
  0xa4   :  { %v141_v41 = vld [vmem:[#allocation2 + $0x11] sm:$0xff]  ;;  %v117_v42 = vpop.f32.mrf.mxu0 }
  0xa5   :  { %v295_v43 = vadd.f32 %v294_v27, %v141_v41  ;;  %135 = vst.msk [vmem:[#allocation2 + $0x20] sm:$0xff] %vm129_vm2, %v117_v42  ;;  %v300_v45 = vpop.f32.mrf.mxu1  ;;  %v783_v42 = vld [vmem:[%s1091_s6] ss:$0 sm:$0xff]  ;;  %s815_s6 = smov 18  }
  0xa7   :  { %v318_v46 = vadd.f32 %v970_v21, %v295_v43 }
  0xa9   :  { %v326_v48 = vmax.f32 %v318_v46, 0.0 }
  0xaa   :  { %v340_v49 = vld [vmem:[#allocation2] ss:$2 sm:$0xff]  ;;  %v348_v50 = vld [vmem:[#allocation2 + $0x1] ss:$2 sm:$0xff] }
  0xab   :  { %334 = vst.msk [vmem:[#allocation2 + $0x10] sm:$0xff] %vm129_vm2, %v326_v48  ;;  %v355_v51 = vmax.f32 %v340_v49, %v348_v50 }
  0xac   :  { %v142_v53 = vld [vmem:[#allocation2 + $0x19] sm:$0xff]  ;;  %v120_v54 = vpop.f32.mrf.mxu0 }
  0xad   :  { %v263_v55 = vsel %vm255_vm3, 0.0, %v142_v53  ;;  %136 = vst.msk [vmem:[#allocation2 + $0x28] sm:$0xff] %vm129_vm2, %v120_v54  ;;  %760 = vmatmul.msk.f32.vlgmr.msrb.gmra.mxu3 %vm129_vm2, %v355_v51  ;;  %v303_v60 = vpop.f32.mrf.mxu1  ;;  %vm718_vm3 = vcmask 9216  }
  0xae   :  { %v298_v56 = vadd.f32 %v297_v35, %v263_v55  ;;  %v404_v35 = vand.u32 15, %v982_v39 }
  0xb0   :  { %v319_v59 = vadd.f32 %v970_v21, %v298_v56  ;;  %vm430_vm6 = vcmp.eq.s32.totalorder %v404_v35, 15  ;;  %v688_v35 = vld [vmem:[%s1096_s11 + $0x10] sm:$0xff] }
  0xb2   :  { %v327_v62 = vmax.f32 %v319_v59, 0.0  ;;  %v360_v63 = vld [vmem:[#allocation2 + $0x2] ss:$2 sm:$0xff]  ;;  %v368_v0 = vld [vmem:[#allocation2 + $0x3] ss:$2 sm:$0xff] }
  0xb3   :  { %v375_v1 = vmax.f32 %v360_v63, %v368_v0 }
  0xb4   :  { %335 = vst.msk [vmem:[#allocation2 + $0x18] sm:$0xff] %vm129_vm2, %v327_v62  ;;  %v143_v2 = vld [vmem:[#allocation2 + $0x21] sm:$0xff]  ;;  %v123_v3 = vpop.f32.mrf.mxu0 }
  0xb5   :  { %v301_v4 = vadd.f32 %v300_v45, %v143_v2  ;;  %137 = vst.msk [vmem:[#allocation2 + $0x30] sm:$0xff] %vm129_vm2, %v123_v3  ;;  %755 = vmatmul.msk.f32.vlgmr.msrb.gmra.mxu2 %vm129_vm2, %v375_v1  ;;  %v306_v9 = vpop.f32.mrf.mxu1 }
  0xb7   :  { %v320_v6 = vadd.f32 %v970_v21, %v301_v4 }
  0xb9   :  { %v328_v7 = vmax.f32 %v320_v6, 0.0 }
  0xbb   :  { %336 = vst.msk [vmem:[#allocation2 + $0x20] sm:$0xff] %vm129_vm2, %v328_v7  ;;  %v342_v11 = vld [vmem:[#allocation2 + $0x10] ss:$2 sm:$0xff]  ;;  %v350_v12 = vld [vmem:[#allocation2 + $0x11] ss:$2 sm:$0xff] }
  0xbc   :  { %v144_v13 = vld [vmem:[#allocation2 + $0x29] sm:$0xff]  ;;  %v145_v14 = vld [vmem:[#allocation2 + $0x31] sm:$0xff]  ;;  %v356_v15 = vmax.f32 %v342_v11, %v350_v12 }
  0xbd   :  { %v304_v16 = vadd.f32 %v303_v60, %v144_v13  ;;  %v307_v17 = vadd.f32 %v306_v9, %v145_v14  ;;  %339 = vst.msk [vmem:[#allocation2 + $0x38] sm:$0xff] %vm129_vm2, %v331_v8  ;;  %v619_v12 = vld [vmem:[%s1092_s7 + $0x28] sm:$0xff]  ;;  %v618_v13 = vld [vmem:[%s1092_s7 + $0x20] sm:$0xff]  ;;  %v617_v14 = vld [vmem:[%s1092_s7 + $0x18] sm:$0xff] }
  0xbe   :  { %761 = vmatmul.msk.f32.gmra.mxu3 %vm129_vm2, %v356_v15  ;;  %638 = vmatpush.msra.mxu2 %v619_v12  ;;  %v616_v15 = vld [vmem:[%s1092_s7 + $0x10] sm:$0xff] }
  0xbf   :  { %v321_v19 = vadd.f32 %v970_v21, %v304_v16  ;;  %v322_v20 = vadd.f32 %v970_v21, %v307_v17  ;;  %v615_v16 = vld [vmem:[%s1092_s7 + $0x8] sm:$0xff]  ;;  %v614_v17 = vld [vmem:[%s1092_s7] sm:$0xff] }
  0xc0   :  { %639 = vmatpush.msra.mxu2 %v618_v13 }
  0xc1   :  { %v329_v22 = vmax.f32 %v321_v19, 0.0  ;;  %v330_v23 = vmax.f32 %v322_v20, 0.0  ;;  %v655_v19 = vld [vmem:[%s1094_s9 + $0x30] sm:$0xff]  ;;  %v654_v20 = vld [vmem:[%s1094_s9 + $0x28] sm:$0xff] }
  0xc2   :  { %v362_v24 = vld [vmem:[#allocation2 + $0x12] ss:$2 sm:$0xff]  ;;  %v370_v25 = vld [vmem:[#allocation2 + $0x13] ss:$2 sm:$0xff]  ;;  %640 = vmatpush.msra.mxu2 %v617_v14  ;;  %674 = vmatpush.msra.mxu3 %v655_v19 }
  0xc3   :  { %337 = vst.msk [vmem:[#allocation2 + $0x28] sm:$0xff] %vm129_vm2, %v329_v22  ;;  %v376_v26 = vmax.f32 %v362_v24, %v370_v25  ;;  %v653_v22 = vld [vmem:[%s1094_s9 + $0x20] sm:$0xff] }
  0xc4   :  { %338 = vst.msk [vmem:[#allocation2 + $0x30] sm:$0xff] %vm129_vm2, %v330_v23  ;;  %641 = vmatpush.msra.mxu2 %v616_v15  ;;  %675 = vmatpush.msra.mxu3 %v654_v20  ;;  %v652_v23 = vld [vmem:[%s1094_s9 + $0x18] sm:$0xff] }
  0xc5   :  { %v432_v27 = vsel %vm428_vm5, 0.0, %v376_v26  ;;  %v651_v26 = vld [vmem:[%s1094_s9 + $0x10] sm:$0xff] }
  0xc6   :  { %756 = vmatmul.msk.f32.gmra.mxu2 %vm129_vm2, %v432_v27  ;;  %676 = vmatpush.msra.mxu3 %v653_v22 }
  0xc7   :  { %642 = vmatpush.msra.mxu2 %v615_v16 }
  0xc8   :  { %677 = vmatpush.msra.mxu3 %v652_v23 }
  0xc9   :  { %643 = vmatpush.msra.mxu2 %v614_v17 }
  0xca   :  { %v344_v28 = vld [vmem:[#allocation2 + $0x20] ss:$2 sm:$0xff]  ;;  %v352_v29 = vld [vmem:[#allocation2 + $0x21] ss:$2 sm:$0xff]  ;;  %678 = vmatpush.msra.mxu3 %v651_v26 }
  0xcb   :  { %v357_v30 = vmax.f32 %v344_v28, %v352_v29  ;;  %v364_v31 = vld [vmem:[#allocation2 + $0x22] ss:$2 sm:$0xff]  ;;  %v372_v32 = vld [vmem:[#allocation2 + $0x23] ss:$2 sm:$0xff]  ;;  %v366_v21 = vld [vmem:[#allocation2 + $0x32] ss:$2 sm:$0xff] }
  0xcc   :  { %v377_v33 = vmax.f32 %v364_v31, %v372_v32  ;;  %v374_v34 = vld [vmem:[#allocation2 + $0x33] ss:$2 sm:$0xff]  ;;  %v346_v36 = vld [vmem:[#allocation2 + $0x30] ss:$2 sm:$0xff]  ;;  %v650_v28 = vld [vmem:[%s1094_s9 + $0x8] sm:$0xff] }
  0xcd   :  { %762 = vmatmul.msk.f32.gmra.mxu3 %vm129_vm2, %v357_v30  ;;  %v354_v37 = vld [vmem:[#allocation2 + $0x31] ss:$2 sm:$0xff]  ;;  %v378_v38 = vmax.f32 %v366_v21, %v374_v34  ;;  %v649_v21 = vld [vmem:[%s1094_s9] sm:$0xff] }
  0xce   :  { %757 = vmatmul.msk.f32.gmra.mxu2 %vm129_vm2, %v377_v33  ;;  %v358_v40 = vmax.f32 %v346_v36, %v354_v37  ;;  %679 = vmatpush.msra.mxu3 %v650_v28  ;;  %v689_v34 = vld [vmem:[%s1096_s11 + $0x18] sm:$0xff]  ;;  %v784_v36 = vld [vmem:[%s1093_s8] ss:$0 sm:$0xff] }
  0xcf   :  { %v434_v41 = vsel %vm430_vm6, 0.0, %v378_v38  ;;  %710 = vmatpush.msrb.mxu2 %v689_v34 }
  0xd0   :  { %680 = vmatpush.msra.mxu3 %v649_v21 }
  0xd1   :  { %711 = vmatpush.msrb.mxu2 %v688_v35 }
  0xd5   :  { %763 = vmatmul.msk.f32.gmra.mxu3 %vm129_vm2, %v358_v40 }
  0xd6   :  { %758 = vmatmul.msk.f32.gmra.mxu2 %vm129_vm2, %v434_v41  ;;  %v687_v41 = vld [vmem:[%s1096_s11 + $0x8] sm:$0xff]  ;;  %vm694_vm2 = vcmask 261120  }
  0xd7   :  { %712 = vmatpush.msrb.mxu2 %v687_v41 }
 0x130   :  { %v515_v43 = vpop.f32.mrf.mxu3 }
 0x138   :  { %v471_v44 = vpop.f32.mrf.mxu2 }
 0x139   :  { %v516_v45 = vadd.f32 %v515_v43, %v471_v44  ;;  %v785_v43 = vld [vmem:[%s1095_s10] ss:$0 sm:$0xff] }
 0x13b   :  { %v531_v46 = vadd.f32 %v783_v42, %v516_v45 }
 0x13d   :  { %v535_v39 = vmax.f32 %v531_v46, 0.0 }
 0x13f   :  { %540 = vst.msk [vmem:[#allocation3] sm:$0xff] %vm539_vm7, %v535_v39  ;;  %v786_v39 = vld [vmem:[%s1097_s12] ss:$0 sm:$0xff] }
 0x141   :  { %v518_v47 = vpop.f32.mrf.mxu3 }
 0x149   :  { %v474_v48 = vpop.f32.mrf.mxu2 }
 0x14a   :  { %v519_v49 = vadd.f32 %v518_v47, %v474_v48 }
 0x14c   :  { %v532_v50 = vadd.f32 %v783_v42, %v519_v49 }
 0x14e   :  { %v536_v51 = vmax.f32 %v532_v50, 0.0 }
 0x150   :  { %541 = vst.msk [vmem:[#allocation3 + $0x8] sm:$0xff] %vm539_vm7, %v536_v51  ;;  %v521_v52 = vpop.f32.mrf.mxu3 }
 0x151   :  { %v477_v53 = vpop.f32.mrf.mxu2 }
 0x152   :  { %v522_v54 = vadd.f32 %v521_v52, %v477_v53 }
 0x154   :  { %v533_v55 = vadd.f32 %v783_v42, %v522_v54 }
 0x156   :  { %v537_v56 = vmax.f32 %v533_v55, 0.0 }
 0x157   :  { %v544_v57 = vld [vmem:[#allocation3] ss:$2 sm:$0xff]  ;;  %v548_v58 = vld [vmem:[#allocation3 + $0x1] ss:$2 sm:$0xff] }
 0x158   :  { %v551_v59 = vmax.f32 %v544_v57, %v548_v58  ;;  %542 = vst.msk [vmem:[#allocation3 + $0x10] sm:$0xff] %vm539_vm7, %v537_v56  ;;  %v524_v60 = vpop.f32.mrf.mxu3 }
 0x159   :  { %v480_v61 = vpop.f32.mrf.mxu2 }
 0x15a   :  { %553 = vst.msk [vmem:[#allocation3] sm:$0xff] %vm539_vm7, %v551_v59  ;;  %v525_v62 = vadd.f32 %v524_v60, %v480_v61 }
 0x15c   :  { %v534_v63 = vadd.f32 %v783_v42, %v525_v62  ;;  %v686_v42 = vld [vmem:[%s1096_s11] sm:$0xff]  ;;  %s727_s11 = sshll.u32 %s1098_s13, 4  ;;  %s728_s11 = int_to_ptr.hbm [resolvable:$true] %s727_s11 }
 0x15d   :  { %713 = vmatpush.msrb.mxu2 %v686_v42 }
 0x15e   :  { %v538_v0 = vmax.f32 %v534_v63, 0.0 }
 0x160   :  { %543 = vst.msk [vmem:[#allocation3 + $0x18] sm:$0xff] %vm539_vm7, %v538_v0 }
 0x167   :  { %v546_v1 = vld [vmem:[#allocation3 + $0x10] ss:$2 sm:$0xff]  ;;  %v550_v2 = vld [vmem:[#allocation3 + $0x11] ss:$2 sm:$0xff] }
 0x168   :  { %v552_v3 = vmax.f32 %v546_v1, %v550_v2 }
 0x16a   :  { %554 = vst.msk [vmem:[#allocation3 + $0x8] sm:$0xff] %vm539_vm7, %v552_v3 }
 0x171   :  { %v590_v4 = vld [vmem:[#allocation3 + $0x5] ss:$8 sm:$0x3]  ;;  %v574_v5 = vld [vmem:[#allocation3 + $0x3] ss:$8 sm:$0x3] }
 0x172   :  { %592 = vrot.lane.b32.xlu2 %v590_v4, %s814_s5  ;;  %576 = vrot.lane.b32.xlu1 %v574_v5, %s815_s6  ;;  %v558_v6 = vld [vmem:[#allocation3 + $0x1] ss:$8 sm:$0x3]  ;;  %v555_v7 = vld [vmem:[#allocation3] ss:$8 sm:$0x3] }
 0x173   :  { %560 = vrot.lane.b32.xlu0 %v558_v6, %s816_s24  ;;  %557 = vst.msk [vmem:[#allocation4] sm:$0x3] %vm556_vm8, %v555_v7  ;;  %v598_v8 = vld [vmem:[#allocation3 + $0x6] ss:$8 sm:$0x3] }
 0x174   :  { %v582_v9 = vld [vmem:[#allocation3 + $0x4] ss:$8 sm:$0x3]  ;;  %v566_v10 = vld [vmem:[#allocation3 + $0x2] ss:$8 sm:$0x3] }
 0x175   :  { %v606_v11 = vld [vmem:[#allocation3 + $0x7] ss:$8 sm:$0x3] }
 0x17a   :  { %600 = vrot.lane.b32.xlu2 %v598_v8, %s817_s25  ;;  %584 = vrot.lane.b32.xlu1 %v582_v9, %s818_s26 }
 0x17b   :  { %568 = vrot.lane.b32.xlu0 %v566_v10, %s819_s27 }
 0x183   :  { %608 = vrot.lane.b32.xlu0 %v606_v11, %s820_s28 }
 0x1cc   :  { %v593_v27 = vpop.permute.xlu2 %592 }
 0x1d4   :  { %v601_v31 = vpop.permute.xlu2 %600 }
 0x1e4   :  { %v577_v24 = vpop.permute.xlu1 %576 }
 0x1e5   :  { %v561_v25 = vpop.permute.xlu0 %560 }
 0x1e6   :  { %564 = vst.msk [vmem:[#allocation4] sm:$0x3] %vm563_vm9, %v561_v25 }
 0x1ec   :  { %v585_v30 = vpop.permute.xlu1 %584 }
 0x1ed   :  { %v569_v29 = vpop.permute.xlu0 %568 }
 0x1ee   :  { %572 = vst.msk [vmem:[#allocation4] sm:$0x3] %vm571_vm10, %v569_v29 }
 0x1ef   :  { %580 = vst.msk [vmem:[#allocation4] sm:$0x3] %vm579_vm11, %v577_v24 }
 0x1f0   :  { %588 = vst.msk [vmem:[#allocation4] sm:$0x3] %vm587_vm12, %v585_v30 }
 0x1f1   :  { %596 = vst.msk [vmem:[#allocation4] sm:$0x3] %vm595_vm13, %v593_v27 }
 0x1f2   :  { %604 = vst.msk [vmem:[#allocation4] sm:$0x3] %vm603_vm14, %v601_v31 }
 0x1f5   :  { %v609_v32 = vpop.permute.xlu0 %608 }
 0x1f6   :  { %612 = vst.msk [vmem:[#allocation4] sm:$0x3] %vm611_vm15, %v609_v32 }
 0x1fd   :  { %v613_v33 = vld [vmem:[#allocation4] sm:$0x3] }
 0x1fe   :  { %764 = vmatmul.msk.f32.vlgmr.msra.gmra.mxu2 %vm624_vm0, %v613_v33 }
 0x281   :  { %v645_v37 = vpop.f32.mrf.mxu2 }
 0x282   :  { %v646_v38 = vadd.f32 %v784_v36, %v645_v37 }
 0x284   :  { %v648_v40 = vmax.f32 %v646_v38, 0.0 }
 0x286   :  { %765 = vmatmul.msk.f32.vlgmr.msra.gmra.mxu3 %vm661_vm1, %v648_v40 }
 0x309   :  { %v682_v44 = vpop.f32.mrf.mxu3 }
 0x30a   :  { %v683_v45 = vadd.f32 %v785_v43, %v682_v44 }
 0x30c   :  { %v685_v46 = vmax.f32 %v683_v45, 0.0 }
 0x30e   :  { %766 = vmatmul.msk.f32.vlgmr.msrb.gmra.mxu2 %vm694_vm2, %v685_v46 }
 0x391   :  { %v715_v47 = vpop.f32.mrf.mxu2 }
 0x392   :  { %v716_v48 = vadd.f32 %v786_v39, %v715_v47 }
 0x394   :  { %719 = vst.msk [vmem:[#allocation5] sm:$0x3] %vm718_vm3, %v716_v48 }
 0x395   :  { %730 = dma.vmem_to_hbm [thread:$0]  %s726_s4, 32, %s728_s11, [#allocation6]  }
 0x396   :  { %811 = dma.done.wait [#allocation6], 32  }
 0x397   :  { %812 = vsyncadd [#allocation6], 4294967264 }
 0x398   :  { %735 = vsyncpa [#allocation6], 1 }

</bundles_post_ra>
